<compile_context>
chip_gen: v5e
topology: v5e:2x2
jax: 0.10.0
libtpu: 0.0.40
codegen_flags: <defaults>
</compile_context>

<pallas_src>
import jax
import jax.numpy as jnp
from jax.experimental import pallas as pl
from jax.experimental.pallas import tpu as pltpu

_LANES = 128
_SUBLANES = 8

# Steady-state tiles (rows of 128 f32 lanes per grid step).
# rgb: 512*128*4B = 256 KiB / buffer / input;  grad: 3*256*128*4B = 384 KiB.
# Double-buffered total ~1.8 MiB -> comfortably under scoped VMEM on v5e/v6e/v7x.
_RGB_TILE_ROWS_MAX = 512
_GRAD_TILE_ROWS_MAX = 256


def _cdiv(a, b):
    return -(-a // b)


def _round_up(x, m):
    return _cdiv(x, m) * m


def _volsdf_partial_kernel(rgb_ref, gt_ref, grad_ref, rgb_acc_ref, eik_acc_ref):
    """One grid step: VPU-only partial sums into lane-dense (1,8,128) accumulators."""
    j = pl.program_id(1)

    @pl.when(j == 0)
    def _init():
        rgb_acc_ref[...] = jnp.zeros_like(rgb_acc_ref)
        eik_acc_ref[...] = jnp.zeros_like(eik_acc_ref)

    # ---- RGB L1 partial sum over a lane-dense (TR, 128) slab -------------
    diff = jnp.abs(rgb_ref[...] - gt_ref[...])                    # (TR, 128)  VPU
    rgb_part = diff.reshape(-1, _SUBLANES, _LANES).sum(axis=0)    # (8, 128)   vreg adds
    rgb_acc_ref[...] += rgb_part[None]

    # ---- Eikonal partial sum over a (3, TG, 128) slab --------------------
    g = grad_ref[...]                                             # (3, TG, 128)
    sq = g[0] * g[0] + g[1] * g[1] + g[2] * g[2]                  # (TG, 128)  VPU
    err = jnp.sqrt(sq) - 1.0                                      # EUP sqrt
    err = err * err
    eik_part = err.reshape(-1, _SUBLANES, _LANES).sum(axis=0)     # (8, 128)
    eik_acc_ref[...] += eik_part[None]


def volsdf_loss(model_outputs, ground_truth, eikonal_weight):
    rgb_values = model_outputs["rgb_values"].astype(jnp.float32)       # [N, 3]
    rgb_gt = ground_truth["rgb"].astype(jnp.float32).reshape(-1, 3)    # [N, 3]
    n_rgb_elems = rgb_values.size                                      # 3N

    has_grad = "grad_theta" in model_outputs
    if has_grad:
        grad_theta = model_outputs["grad_theta"].astype(jnp.float32)   # [M, 3]
    else:
        # Unit-norm dummy point -> eikonal sum is exactly 0 (matches torch path).
        grad_theta = jnp.array([[1.0, 0.0, 0.0]], dtype=jnp.float32)
    m = grad_theta.shape[0]

    # ---- trace-time grid / tile derivation --------------------------------
    rgb_rows = max(_cdiv(n_rgb_elems, _LANES), _SUBLANES)
    rgb_tile = min(_RGB_TILE_ROWS_MAX, _round_up(rgb_rows, _SUBLANES))
    grad_rows = max(_cdiv(m, _LANES), _SUBLANES)
    grad_tile = min(_GRAD_TILE_ROWS_MAX, _round_up(grad_rows, _SUBLANES))

    steps_needed = max(_cdiv(rgb_rows, rgb_tile), _cdiv(grad_rows, grad_tile), 1)
    n_par = 2 if steps_needed >= 2 else 1      # 2 TCs on v7x; serial loop elsewhere
    n_steps = _cdiv(steps_needed, n_par)
    total_steps = n_par * n_steps

    # ---- repack RGB / GT into zero-padded lane-dense slabs -----------------
    rgb_slab_rows = total_steps * rgb_tile
    pad_rgb = rgb_slab_rows * _LANES - n_rgb_elems
    rgb_flat = rgb_values.reshape(-1)
    gt_flat = rgb_gt.reshape(-1)
    if pad_rgb:
        rgb_flat = jnp.pad(rgb_flat, (0, pad_rgb))
        gt_flat = jnp.pad(gt_flat, (0, pad_rgb))
    rgb_slab = rgb_flat.reshape(rgb_slab_rows, _LANES)
    gt_slab = gt_flat.reshape(rgb_slab_rows, _LANES)

    # ---- repack grad_theta as (3, rows, 128); pad with unit-norm columns ---
    grad_slab_rows = total_steps * grad_tile
    m_pad = grad_slab_rows * _LANES
    g_t = grad_theta.T                                                  # (3, M)
    if m_pad > m:
        pad_block = jnp.zeros((3, m_pad - m), jnp.float32).at[0, :].set(1.0)
        g_t = jnp.concatenate([g_t, pad_block], axis=1)
    grad_slab = g_t.reshape(3, grad_slab_rows, _LANES)

    out_shapes = (
        jax.ShapeDtypeStruct((n_par, _SUBLANES, _LANES), jnp.float32),  # rgb partials
        jax.ShapeDtypeStruct((n_par, _SUBLANES, _LANES), jnp.float32),  # eik partials
    )

    grid_spec = pltpu.PrefetchScalarGridSpec(
        num_scalar_prefetch=0,
        grid=(n_par, n_steps),
        in_specs=[
            pl.BlockSpec((rgb_tile, _LANES), lambda p, j: (p * n_steps + j, 0)),
            pl.BlockSpec((rgb_tile, _LANES), lambda p, j: (p * n_steps + j, 0)),
            pl.BlockSpec((3, grad_tile, _LANES), lambda p, j: (0, p * n_steps + j, 0)),
        ],
        out_specs=(
            pl.BlockSpec((1, _SUBLANES, _LANES), lambda p, j: (p, 0, 0)),
            pl.BlockSpec((1, _SUBLANES, _LANES), lambda p, j: (p, 0, 0)),
        ),
    )

    bytes_accessed = 4 * (rgb_slab.size + gt_slab.size + grad_slab.size
                          + 2 * n_par * _SUBLANES * _LANES)
    cost = pl.CostEstimate(
        flops=3 * (rgb_slab.size + gt_slab.size) + 10 * grad_slab_rows * _LANES,
        transcendentals=grad_slab_rows * _LANES,
        bytes_accessed=bytes_accessed,
    )

    rgb_part, eik_part = pl.pallas_call(
        _volsdf_partial_kernel,
        out_shape=out_shapes,
        grid_spec=grid_spec,
        compiler_params=pltpu.CompilerParams(
            dimension_semantics=("parallel", "arbitrary"),
            vmem_limit_bytes=32 * 1024 * 1024,
        ),
        cost_estimate=cost,
    )(rgb_slab, gt_slab, grad_slab)

    # ---- tiny epilogue: one cross-lane reduce + trace-time reciprocals -----
    rgb_loss = jnp.sum(rgb_part) * jnp.float32(1.0 / n_rgb_elems)
    eik_loss = jnp.sum(eik_part) * jnp.float32(1.0 / m)
    if not has_grad:
        eik_loss = jnp.float32(0.0)
    loss = rgb_loss + jnp.float32(eikonal_weight) * eik_loss

    return {"loss": loss, "rgb_loss": rgb_loss, "eikonal_loss": eik_loss}


if __name__ == "__main__":
    key = jax.random.PRNGKey(0)
    k1, k2, k3 = jax.random.split(key, 3)

    B, P = 2, 64          # batch of rays -> N = 128 rendered pixels
    N = B * P
    M = 128               # eikonal sample points

    rgb_values = jax.random.uniform(k1, (N, 3), dtype=jnp.float32)
    rgb_gt = jax.random.uniform(k2, (B, P, 3), dtype=jnp.float32)
    grad_theta = jax.random.normal(k3, (M, 3), dtype=jnp.float32)

    eikonal_weight = 0.1

    model_outputs = {"rgb_values": rgb_values, "grad_theta": grad_theta}
    ground_truth = {"rgb": rgb_gt}

    out = volsdf_loss(model_outputs, ground_truth, eikonal_weight)
    jax.block_until_ready(out)

    # Pure-JAX reference check
    ref_rgb = jnp.mean(jnp.abs(rgb_values - rgb_gt.reshape(-1, 3)))
    ref_eik = jnp.mean((jnp.linalg.norm(grad_theta, axis=1) - 1.0) ** 2)
    ref_loss = ref_rgb + eikonal_weight * ref_eik
    assert jnp.allclose(out["rgb_loss"], ref_rgb, atol=1e-5, rtol=1e-5)
    assert jnp.allclose(out["eikonal_loss"], ref_eik, atol=1e-5, rtol=1e-5)
    assert jnp.allclose(out["loss"], ref_loss, atol=1e-5, rtol=1e-5)

    # Also exercise the 'no grad_theta' branch (eikonal_loss == 0).
    out2 = volsdf_loss({"rgb_values": rgb_values}, ground_truth, eikonal_weight)
    jax.block_until_ready(out2)
    assert jnp.allclose(out2["eikonal_loss"], 0.0)
    assert jnp.allclose(out2["loss"], ref_rgb, atol=1e-5, rtol=1e-5)

    print("KERNEL_OK")
</pallas_src>

<mosaic_0001>
module attributes {stable_mosaic.version = 11 : i64} {
  func.func @_volsdf_partial_kernel(%arg0: i32, %arg1: i32, %arg2: memref<8x128xf32, #tpu.memory_space<vmem>>, %arg3: memref<8x128xf32, #tpu.memory_space<vmem>>, %arg4: memref<3x8x128xf32, #tpu.memory_space<vmem>>, %arg5: memref<1x8x128xf32, #tpu.memory_space<vmem>>, %arg6: memref<1x8x128xf32, #tpu.memory_space<vmem>>) attributes {dimension_semantics = [#tpu.dimension_semantics<parallel>, #tpu.dimension_semantics<arbitrary>], iteration_bounds = array<i64: 1, 1>, scalar_prefetch = 0 : i64, scratch_operands = 0 : i64, tpu.core_type = #tpu.core_type<tc>, window_params = [{transform_indices = @transform_0, window_bounds = array<i64: 8, 128>}, {transform_indices = @transform_1, window_bounds = array<i64: 8, 128>}, {transform_indices = @transform_2, window_bounds = array<i64: 3, 8, 128>}, {transform_indices = @transform_3, window_bounds = array<i64: 1, 8, 128>}, {transform_indices = @transform_4, window_bounds = array<i64: 1, 8, 128>}]} {
    %c0_i32 = arith.constant 0 : i32
    %0 = arith.cmpi eq, %arg1, %c0_i32 : i32
    %1 = arith.extui %0 : i1 to i32
    %c0_i32_0 = arith.constant 0 : i32
    %2 = arith.cmpi ne, %1, %c0_i32_0 : i32
    scf.if %2 {
      %cst_21 = arith.constant 0.000000e+00 : f32
      %41 = vector.broadcast %cst_21 : f32 to vector<1x8x128xf32>
      %c0_22 = arith.constant 0 : index
      %c0_23 = arith.constant 0 : index
      %c0_24 = arith.constant 0 : index
      %42 = vector.load %arg5[%c0_22, %c0_23, %c0_24] : memref<1x8x128xf32, #tpu.memory_space<vmem>>, vector<1x8x128xf32>
      tpu.vector_store %arg5[%c0_22, %c0_23, %c0_24], %41 {strides = array<i32>} : memref<1x8x128xf32, #tpu.memory_space<vmem>>, vector<1x8x128xf32>,
      %cst_25 = arith.constant 0.000000e+00 : f32
      %43 = vector.broadcast %cst_25 : f32 to vector<1x8x128xf32>
      %c0_26 = arith.constant 0 : index
      %c0_27 = arith.constant 0 : index
      %c0_28 = arith.constant 0 : index
      %44 = vector.load %arg6[%c0_26, %c0_27, %c0_28] : memref<1x8x128xf32, #tpu.memory_space<vmem>>, vector<1x8x128xf32>
      tpu.vector_store %arg6[%c0_26, %c0_27, %c0_28], %43 {strides = array<i32>} : memref<1x8x128xf32, #tpu.memory_space<vmem>>, vector<1x8x128xf32>,
    } else {
    }
    %c0 = arith.constant 0 : index
    %c0_1 = arith.constant 0 : index
    %3 = vector.load %arg2[%c0, %c0_1] : memref<8x128xf32, #tpu.memory_space<vmem>>, vector<8x128xf32>
    %c0_2 = arith.constant 0 : index
    %c0_3 = arith.constant 0 : index
    %4 = vector.load %arg3[%c0_2, %c0_3] : memref<8x128xf32, #tpu.memory_space<vmem>>, vector<8x128xf32>
    %5 = arith.subf %3, %4 : vector<8x128xf32>
    %6 = math.absf %5 : vector<8x128xf32>
    %7 = vector.shape_cast %6 : vector<8x128xf32> to vector<1x8x128xf32>
    %cst = arith.constant dense<0.000000e+00> : vector<8x128xf32>
    %8 = vector.multi_reduction <add>, %7, %cst [0] : vector<1x8x128xf32> to vector<8x128xf32>
    %c0_4 = arith.constant 0 : index
    %c0_5 = arith.constant 0 : index
    %c0_6 = arith.constant 0 : index
    %9 = vector.load %arg5[%c0_4, %c0_5, %c0_6] : memref<1x8x128xf32, #tpu.memory_space<vmem>>, vector<1x8x128xf32>
    %10 = vector.shape_cast %8 : vector<8x128xf32> to vector<1x8x128xf32>
    %11 = arith.addf %9, %10 : vector<1x8x128xf32>
    %c0_7 = arith.constant 0 : index
    %c0_8 = arith.constant 0 : index
    %c0_9 = arith.constant 0 : index
    %12 = vector.load %arg5[%c0_7, %c0_8, %c0_9] : memref<1x8x128xf32, #tpu.memory_space<vmem>>, vector<1x8x128xf32>
    tpu.vector_store %arg5[%c0_7, %c0_8, %c0_9], %11 {strides = array<i32>} : memref<1x8x128xf32, #tpu.memory_space<vmem>>, vector<1x8x128xf32>,
    %c0_10 = arith.constant 0 : index
    %c0_11 = arith.constant 0 : index
    %c0_12 = arith.constant 0 : index
    %13 = vector.load %arg4[%c0_10, %c0_11, %c0_12] : memref<3x8x128xf32, #tpu.memory_space<vmem>>, vector<3x8x128xf32>
    %14 = vector.extract_strided_slice %13 {offsets = [0, 0, 0], sizes = [1, 8, 128], strides = [1, 1, 1]} : vector<3x8x128xf32> to vector<1x8x128xf32>
    %15 = vector.shape_cast %14 : vector<1x8x128xf32> to vector<8x128xf32>
    %16 = vector.extract_strided_slice %13 {offsets = [0, 0, 0], sizes = [1, 8, 128], strides = [1, 1, 1]} : vector<3x8x128xf32> to vector<1x8x128xf32>
    %17 = vector.shape_cast %16 : vector<1x8x128xf32> to vector<8x128xf32>
    %18 = arith.mulf %15, %17 : vector<8x128xf32>
    %19 = vector.extract_strided_slice %13 {offsets = [1, 0, 0], sizes = [1, 8, 128], strides = [1, 1, 1]} : vector<3x8x128xf32> to vector<1x8x128xf32>
    %20 = vector.shape_cast %19 : vector<1x8x128xf32> to vector<8x128xf32>
    %21 = vector.extract_strided_slice %13 {offsets = [1, 0, 0], sizes = [1, 8, 128], strides = [1, 1, 1]} : vector<3x8x128xf32> to vector<1x8x128xf32>
    %22 = vector.shape_cast %21 : vector<1x8x128xf32> to vector<8x128xf32>
    %23 = arith.mulf %20, %22 : vector<8x128xf32>
    %24 = arith.addf %18, %23 : vector<8x128xf32>
    %25 = vector.extract_strided_slice %13 {offsets = [2, 0, 0], sizes = [1, 8, 128], strides = [1, 1, 1]} : vector<3x8x128xf32> to vector<1x8x128xf32>
    %26 = vector.shape_cast %25 : vector<1x8x128xf32> to vector<8x128xf32>
    %27 = vector.extract_strided_slice %13 {offsets = [2, 0, 0], sizes = [1, 8, 128], strides = [1, 1, 1]} : vector<3x8x128xf32> to vector<1x8x128xf32>
    %28 = vector.shape_cast %27 : vector<1x8x128xf32> to vector<8x128xf32>
    %29 = arith.mulf %26, %28 : vector<8x128xf32>
    %30 = arith.addf %24, %29 : vector<8x128xf32>
    %31 = math.sqrt %30 : vector<8x128xf32>
    %cst_13 = arith.constant 1.000000e+00 : f32
    %32 = vector.broadcast %cst_13 : f32 to vector<8x128xf32>
    %33 = arith.subf %31, %32 : vector<8x128xf32>
    %34 = arith.mulf %33, %33 : vector<8x128xf32>
    %35 = vector.shape_cast %34 : vector<8x128xf32> to vector<1x8x128xf32>
    %cst_14 = arith.constant dense<0.000000e+00> : vector<8x128xf32>
    %36 = vector.multi_reduction <add>, %35, %cst_14 [0] : vector<1x8x128xf32> to vector<8x128xf32>
    %c0_15 = arith.constant 0 : index
    %c0_16 = arith.constant 0 : index
    %c0_17 = arith.constant 0 : index
    %37 = vector.load %arg6[%c0_15, %c0_16, %c0_17] : memref<1x8x128xf32, #tpu.memory_space<vmem>>, vector<1x8x128xf32>
    %38 = vector.shape_cast %36 : vector<8x128xf32> to vector<1x8x128xf32>
    %39 = arith.addf %37, %38 : vector<1x8x128xf32>
    %c0_18 = arith.constant 0 : index
    %c0_19 = arith.constant 0 : index
    %c0_20 = arith.constant 0 : index
    %40 = vector.load %arg6[%c0_18, %c0_19, %c0_20] : memref<1x8x128xf32, #tpu.memory_space<vmem>>, vector<1x8x128xf32>
    tpu.vector_store %arg6[%c0_18, %c0_19, %c0_20], %39 {strides = array<i32>} : memref<1x8x128xf32, #tpu.memory_space<vmem>>, vector<1x8x128xf32>,
    return
  }
  func.func @transform_0(%arg0: i32, %arg1: i32) -> (i32, i32) {
    %c1_i32 = arith.constant 1 : i32
    %0 = arith.muli %arg0, %c1_i32 : i32
    %1 = arith.addi %0, %arg1 : i32
    %c0_i32 = arith.constant 0 : i32
    %c0_i32_0 = arith.constant 0 : i32
    return %1, %c0_i32 : i32, i32
  }
  func.func @transform_1(%arg0: i32, %arg1: i32) -> (i32, i32) {
    %c1_i32 = arith.constant 1 : i32
    %0 = arith.muli %arg0, %c1_i32 : i32
    %1 = arith.addi %0, %arg1 : i32
    %c0_i32 = arith.constant 0 : i32
    %c0_i32_0 = arith.constant 0 : i32
    return %1, %c0_i32 : i32, i32
  }
  func.func @transform_2(%arg0: i32, %arg1: i32) -> (i32, i32, i32) {
    %c1_i32 = arith.constant 1 : i32
    %0 = arith.muli %arg0, %c1_i32 : i32
    %1 = arith.addi %0, %arg1 : i32
    %c0_i32 = arith.constant 0 : i32
    %c0_i32_0 = arith.constant 0 : i32
    %c0_i32_1 = arith.constant 0 : i32
    return %c0_i32, %1, %c0_i32_0 : i32, i32, i32
  }
  func.func @transform_3(%arg0: i32, %arg1: i32) -> (i32, i32, i32) {
    %c0_i32 = arith.constant 0 : i32
    %c0_i32_0 = arith.constant 0 : i32
    %c0_i32_1 = arith.constant 0 : i32
    return %arg0, %c0_i32, %c0_i32_0 : i32, i32, i32
  }
  func.func @transform_4(%arg0: i32, %arg1: i32) -> (i32, i32, i32) {
    %c0_i32 = arith.constant 0 : i32
    %c0_i32_0 = arith.constant 0 : i32
    %c0_i32_1 = arith.constant 0 : i32
    return %arg0, %c0_i32, %c0_i32_0 : i32, i32, i32
  }
}

</mosaic_0001>

<bundles_post_ra>
// kernel: tpu_custom_call.1
= control target key start
LH: loop header
LB: loop body
LE: loop exit
PB: predicated region body
PF: predicated region fallthrough
CT: control target
= control target key end

     0   :  { %10 = vsyncpa [#allocation3], 0  ;;  %s333_s0 = inlined_call_operand.hbm [shape: f32[8,128], index: 0, kind: input, shape index: {}]   ;;  %s334_s1 = inlined_call_operand.hbm [shape: f32[8,128], index: 1, kind: input, shape index: {}]   ;;  %s335_s2 = inlined_call_operand.hbm [shape: f32[3,8,128], index: 2, kind: input, shape index: {}]   ;;  %s336_s3 = inlined_call_operand.hbm [shape: f32[1,8,128], index: 3, kind: output, shape index: {0}]   ;;  %s337_s4 = inlined_call_operand.hbm [shape: f32[1,8,128], index: 4, kind: output, shape index: {1}]  }
   0x1   :  { %11 = vsyncpa [#allocation6], 0 }
   0x2   :  { %12 = vsyncpa [#allocation4], 0  ;;  %s36_s17 = sshll.u32 %s334_s1, 4  ;;  %s37_s17 = int_to_ptr.hbm [resolvable:$true] %s36_s17 }
   0x3   :  { %13 = vsyncpa [#allocation10], 0  ;;  %s286_s18 = smov [#allocation5]   ;;  %s22_s22 = sshll.u32 %s333_s0, 4  ;;  %s23_s22 = int_to_ptr.hbm [resolvable:$true] %s22_s22 }
   0x4   :  { %s38_s19 = sshll.u32 %s286_s18, 4  ;;  %s287_s23 = smov [#allocation2]   ;;  %s39_s19 = int_to_ptr.vmem [resolvable:$true] %s38_s19 }
   0x5   :  { %41 = dma.hbm_to_vmem [thread:$0]  %s37_s17, 128, %s39_s19, [#allocation6]  }
   0x6   :  { %s24_s24 = sshll.u32 %s287_s23, 4  ;;  %s49_s27 = sshll.u32 %s335_s2, 4  ;;  %s25_s24 = int_to_ptr.vmem [resolvable:$true] %s24_s24  ;;  %s50_s27 = int_to_ptr.hbm [resolvable:$true] %s49_s27 }
   0x7   :  { %27 = dma.hbm_to_vmem [thread:$0]  %s23_s22, 128, %s25_s24, [#allocation3]  }
   0x8   :  { %s288_s1 = smov [#allocation7]   ;;  %s289_s29 = smov 128  }
   0x9   :  { %s51_s28 = sshll.u32 %s288_s1, 4  ;;  %s290_s30 = smov 8   ;;  %s52_s28 = int_to_ptr.vmem [resolvable:$true] %s51_s28 }
   0xa   :  { %57 = dma.hbm_to_vmem [thread:$0]  %s50_s27, 384, %s52_s28, [#allocation6], %s289_s29, %s289_s29, %s290_s30  }
   0xb   :  { %278 = dma.done.wait [#allocation3], 128  }
   0xc   :  { %279 = vsyncadd [#allocation3], 4294967168 }
   0xd   :  { %280 = dma.done.wait [#allocation6], 512  }
   0xe   :  { %281 = vsyncadd [#allocation6], 4294966784  ;;  %v79_v0 = vld [vmem:[#allocation2] sm:$0xff]  ;;  %v80_v1 = vld [vmem:[#allocation5] sm:$0xff]  ;;  %s291_s0 = smov [#allocation8]   ;;  %s120_s7 = sshll.u32 %s336_s3, 4  ;;  %s121_s7 = int_to_ptr.hbm [resolvable:$true] %s120_s7 }
   0xf   :  { %v87_v2 = vld [vmem:[#allocation7] sm:$0xff]  ;;  %v81_v3 = vsub.f32 %v79_v0, %v80_v1  ;;  %v88_v4 = vld [vmem:[#allocation7 + $0x8] sm:$0xff]  ;;  %v89_v5 = vld [vmem:[#allocation7 + $0x10] sm:$0xff]  ;;  %s118_s2 = sshll.u32 %s291_s0, 4  ;;  %s292_s3 = smov [#allocation9]   ;;  %s119_s2 = int_to_ptr.vmem [resolvable:$true] %s118_s2 }
  0x10   :  { %v90_v6 = vmul.f32 %v87_v2, %v87_v2  ;;  %v91_v7 = vmul.f32 %v88_v4, %v88_v4  ;;  %v93_v8 = vmul.f32 %v89_v5, %v89_v5  ;;  %s129_s8 = sshll.u32 %s292_s3, 4  ;;  %s131_s11 = sshll.u32 %s337_s4, 4  ;;  %s130_s8 = int_to_ptr.vmem [resolvable:$true] %s129_s8  ;;  %s132_s11 = int_to_ptr.hbm [resolvable:$true] %s131_s11 }
  0x11   :  { %v82_v9 = vand.u32 2147483647, %v81_v3 }
  0x12   :  { %v92_v10 = vadd.f32 %v91_v7, %v90_v6 }
  0x13   :  { %86 = vst [vmem:[#allocation8] sm:$0xff] %v82_v9 }
  0x14   :  { %v94_v11 = vadd.f32 %v93_v8, %v92_v10  ;;  %123 = dma.vmem_to_hbm [thread:$0]  %s119_s2, 128, %s121_s7, [#allocation4]  }
  0x16   :  { %156 = vrsqrt.f32 %v94_v11  ;;  %vm102_vm0 = vcmp.eq.f32.partialorder %v94_v11, inf  ;;  %v105_v18 = vand.u32 2147483648, %v94_v11  ;;  %vm104_vm1 = vcmp.eq.f32.partialorder %v94_v11, 0.0 }
  0x1c   :  { %v157_v12 = vpop.eup %156 }
  0x1d   :  { %v96_v13 = vmul.f32 %v157_v12, %v94_v11 }
  0x1f   :  { %v97_v14 = vmul.f32 %v157_v12, %v96_v13 }
  0x21   :  { %v98_v15 = vmul.f32 0.5, %v97_v14 }
  0x23   :  { %v99_v16 = vsub.f32 1.5, %v98_v15 }
  0x25   :  { %v100_v17 = vmul.f32 %v157_v12, %v99_v16 }
  0x27   :  { %v101_v19 = vmul.f32 %v100_v17, %v94_v11 }
  0x29   :  { %v103_v20 = vsel %vm102_vm0, %v94_v11, %v101_v19 }
  0x2a   :  { %v106_v21 = vsel %vm104_vm1, %v105_v18, %v103_v20 }
  0x2b   :  { %v147_v22 = vadd.f32 -1.0, %v106_v21 }
  0x2d   :  { %v108_v23 = vmul.f32 %v147_v22, %v147_v22 }
  0x2f   :  { %112 = vst [vmem:[#allocation9] sm:$0xff] %v108_v23 }
  0x30   :  { %134 = dma.vmem_to_hbm [thread:$0]  %s130_s8, 128, %s132_s11, [#allocation10]  }
  0x31   :  { %282 = dma.done.wait [#allocation4], 128  }
  0x32   :  { %283 = vsyncadd [#allocation4], 4294967168 }
  0x33   :  { %284 = dma.done.wait [#allocation10], 128  }
  0x34   :  { %285 = vsyncadd [#allocation10], 4294967168 }
  0x35   :  { %143 = vsyncpa [#allocation3], 1 }
  0x36   :  { %144 = vsyncpa [#allocation6], 1 }
  0x37   :  { %145 = vsyncpa [#allocation4], 1 }
  0x38   :  { %146 = vsyncpa [#allocation10], 1 }

</bundles_post_ra>
